<compile_context>
chip_gen: v7x
topology: tpu7x:2x2x1
jax: 0.10.0
libtpu: 0.0.40
codegen_flags: <defaults>
</compile_context>

<pallas_src>
import functools

import jax
import jax.numpy as jnp
from jax import lax
from jax.experimental import pallas as pl
from jax.experimental.pallas import tpu as pltpu

_INPUT_DIM = 18
_POLICY_DIM = 9
_VALUE_ROW = 9            # row of the fused head holding the value logit
_HEAD_WIDTH = 16          # fused policy(9)+value(1) head, zero-padded to 16 rows
_GRID_MIN_BATCH = 256     # B >= this -> batch-tiled grid path (>=2 tiles)


def _round_up(n, m):
    return ((n + m - 1) // m) * m


def _mlp_kernel(num_hidden_layers, *refs):
    """Batch-on-lanes fused MLP.  refs: x_t, (w_l, b_l)*L, w_head, b_head, out."""
    n_in = 1 + 2 * num_hidden_layers + 2
    in_refs = refs[:n_in]
    out_ref = refs[n_in]

    h = in_refs[0][...]                       # (features, tb) — batch on lanes

    # Hidden layers: h = relu(W @ h + b), f32 accumulation on the MXU.
    for l in range(num_hidden_layers):
        w = in_refs[1 + 2 * l][...]           # (out, in)
        b = in_refs[2 + 2 * l][...]           # (out, 1) f32
        h = jnp.dot(w, h.astype(w.dtype), preferred_element_type=jnp.float32) + b
        h = jnp.maximum(h, 0.0)

    # Fused policy+value head: one matmul -> (16, tb).
    wh = in_refs[-2][...]                     # (16, H)
    bh = in_refs[-1][...]                     # (16, 1) f32
    y = jnp.dot(wh, h.astype(wh.dtype), preferred_element_type=jnp.float32) + bh

    # tanh only on the value row (EUP work = 1 row); single full-width store.
    val = jnp.tanh(y[_VALUE_ROW:_VALUE_ROW + 1, :])          # (1, tb)
    row = lax.broadcasted_iota(jnp.int32, y.shape, 0)
    out_ref[...] = jnp.where(row == _VALUE_ROW, val, y)


def prepare_params(params, *, use_bf16=False):
    """One-time param prep (hoisted off the per-forward path).

    Transposes every Linear weight to (out, in), fuses policy+value heads into
    a single lane-padded (16, H) weight, and applies the optional bf16 cast.
    """
    compute_dtype = jnp.bfloat16 if use_bf16 else jnp.float32

    prepped = {"hidden": []}
    for w, b in params["hidden"]:             # w: (in, out), b: (1, out)
        prepped["hidden"].append(
            (jnp.asarray(w.T, compute_dtype),              # (out, in)
             jnp.asarray(b.reshape(-1, 1), jnp.float32)))  # (out, 1), f32 bias

    wp, bp = params["policy"]                 # (H, 9), (1, 9)
    wv, bv = params["value"]                  # (H, 1), (1, 1)
    H = wp.shape[0]
    w_head = jnp.zeros((_HEAD_WIDTH, H), jnp.float32)
    w_head = w_head.at[:_POLICY_DIM, :].set(wp.T)
    w_head = w_head.at[_VALUE_ROW, :].set(wv[:, 0])
    b_head = jnp.zeros((_HEAD_WIDTH, 1), jnp.float32)
    b_head = b_head.at[:_POLICY_DIM, 0].set(bp[0])
    b_head = b_head.at[_VALUE_ROW, 0].set(bv[0, 0])
    prepped["head"] = (w_head.astype(compute_dtype), b_head)
    return prepped


def _stream_spec(block_shape, index_map, depth=3):
    """Streamed-input spec with deeper pipelining (compute/tile ~ zero, so the
    pipeline is pure DMA).  Falls back to default double buffering if this JAX
    version lacks BlockSpec(pipeline_mode=...)."""
    try:
        return pl.BlockSpec(block_shape, index_map,
                            pipeline_mode=pl.Buffered(depth))
    except (TypeError, AttributeError):
        return pl.BlockSpec(block_shape, index_map)


@functools.partial(jax.jit, static_argnames=("batch_tile",))
def tictactoe_mlp_forward(x, prepped, *, batch_tile=2048):
    """TicTacToeMLP forward via one fused Pallas TPU kernel.

    x: (B, 18) float32
    prepped: output of prepare_params()
    Returns {'policy': (B, 9) f32 logits, 'value': (B,) f32 in [-1, 1]}
    """
    assert batch_tile % 128 == 0, "batch_tile must be a multiple of 128"
    B = x.shape[0]
    hidden = prepped["hidden"]
    w_head, b_head = prepped["head"]
    compute_dtype = w_head.dtype

    # Batch-on-lanes: transpose x once (fuses with the tail pad under jit).
    x_t = jnp.transpose(x).astype(compute_dtype)            # (18, B)

    weight_inputs = []
    for w, b in hidden:
        weight_inputs += [w, b]
    weight_inputs += [w_head, b_head]

    kernel = functools.partial(_mlp_kernel, len(hidden))

    if B < _GRID_MIN_BATCH:
        # Latency path: no grid, whole arrays pinned in VMEM, no pipelining.
        vmem = pl.BlockSpec(memory_space=pltpu.MemorySpace.VMEM)
        fused = pl.pallas_call(
            kernel,
            out_shape=jax.ShapeDtypeStruct((_HEAD_WIDTH, B), jnp.float32),
            in_specs=[vmem] * (1 + len(weight_inputs)),
            out_specs=vmem,
        )(x_t, *weight_inputs)
    else:
        # Throughput path: lane-dense batch tiles; >= 2 tiles so both v7x
        # TensorCores get work via the "parallel" grid axis.
        tb = min(batch_tile, _round_up(pl.cdiv(B, 2), 128))
        num_tiles = pl.cdiv(B, tb)
        b_pad = num_tiles * tb
        if b_pad != B:
            # Tail-only pad of the transposed slab (<= tb-1 extra columns).
            x_t = jnp.pad(x_t, ((0, 0), (0, b_pad - B)))

        def const_spec(a):
            # Constant index_map: weights/biases stay VMEM-resident across tiles.
            return pl.BlockSpec(a.shape, lambda i: (0,) * a.ndim)

        in_specs = [_stream_spec((_INPUT_DIM, tb), lambda i: (0, i))]
        in_specs += [const_spec(a) for a in weight_inputs]

        fused = pl.pallas_call(
            kernel,
            out_shape=jax.ShapeDtypeStruct((_HEAD_WIDTH, b_pad), jnp.float32),
            grid=(num_tiles,),
            in_specs=in_specs,
            out_specs=pl.BlockSpec((_HEAD_WIDTH, tb), lambda i: (0, i)),
            compiler_params=pltpu.CompilerParams(
                # v7x: both TCs via parallel batch tiles (CORE_PARALLEL is an
                # alternative worth sweeping); harmless on v5e/v6e.
                dimension_semantics=("parallel",)),
        )(x_t, *weight_inputs)

    policy = fused[:_POLICY_DIM, :B].T        # (B, 9)
    value = fused[_VALUE_ROW, :B]             # (B,)
    return {"policy": policy, "value": value}


def init_params(key, hidden_sizes):
    """Deterministic init mirroring nn.Linear shapes (stored (in, out))."""
    params = {"hidden": []}
    in_size = _INPUT_DIM
    for h in hidden_sizes:
        key, kw, kb = jax.random.split(key, 3)
        bound = 1.0 / jnp.sqrt(in_size)
        w = jax.random.uniform(kw, (in_size, h), jnp.float32, -bound, bound)
        b = jax.random.uniform(kb, (1, h), jnp.float32, -bound, bound)
        params["hidden"].append((w, b))
        in_size = h
    key, kw, kb = jax.random.split(key, 3)
    bound = 1.0 / jnp.sqrt(in_size)
    params["policy"] = (
        jax.random.uniform(kw, (in_size, 9), jnp.float32, -bound, bound),
        jax.random.uniform(kb, (1, 9), jnp.float32, -bound, bound),
    )
    key, kw, kb = jax.random.split(key, 3)
    params["value"] = (
        jax.random.uniform(kw, (in_size, 1), jnp.float32, -bound, bound),
        jax.random.uniform(kb, (1, 1), jnp.float32, -bound, bound),
    )
    return params


def reference_forward(x, params):
    """Pure-JAX reference for correctness check."""
    h = x
    for w, b in params["hidden"]:
        h = jnp.maximum(h @ w + b, 0.0)
    wp, bp = params["policy"]
    wv, bv = params["value"]
    policy = h @ wp + bp
    value = jnp.tanh(h @ wv + bv)[:, 0]
    return {"policy": policy, "value": value}


def _check(out, ref, batch):
    assert out["policy"].shape == (batch, 9)
    assert out["value"].shape == (batch,)
    assert jnp.allclose(out["policy"], ref["policy"], atol=1e-5, rtol=1e-5)
    assert jnp.allclose(out["value"], ref["value"], atol=1e-5, rtol=1e-5)


if __name__ == "__main__":
    key = jax.random.PRNGKey(0)
    hidden_sizes = [32, 32]

    key, kx, kp = jax.random.split(key, 3)
    params = init_params(kp, hidden_sizes)
    kparams = prepare_params(params)          # one-time head fusion / transpose

    # --- small batch: single-tile, no-grid latency path ---
    batch = 8
    x = jax.random.uniform(kx, (batch, 18), jnp.float32)
    out = tictactoe_mlp_forward(x, kparams)
    jax.block_until_ready(out["policy"])
    jax.block_until_ready(out["value"])
    _check(out, reference_forward(x, params), batch)

    # --- larger batch: exercises the batch-tiled "parallel" grid path
    #     (>= 2 tiles, tail pad, VMEM-resident weights, Buffered stream) ---
    key, kx2 = jax.random.split(key)
    batch2 = 300
    x2 = jax.random.uniform(kx2, (batch2, 18), jnp.float32)
    out2 = tictactoe_mlp_forward(x2, kparams)
    jax.block_until_ready(out2["policy"])
    jax.block_until_ready(out2["value"])
    _check(out2, reference_forward(x2, params), batch2)

    print("KERNEL_OK")
</pallas_src>

<mosaic_0001>
module attributes {stable_mosaic.version = 11 : i64} {
  func.func @_mlp_kernel(%arg0: memref<18x8xf32, #tpu.memory_space<vmem>>, %arg1: memref<32x18xf32, #tpu.memory_space<vmem>>, %arg2: memref<32x1xf32, #tpu.memory_space<vmem>>, %arg3: memref<32x32xf32, #tpu.memory_space<vmem>>, %arg4: memref<32x1xf32, #tpu.memory_space<vmem>>, %arg5: memref<16x32xf32, #tpu.memory_space<vmem>>, %arg6: memref<16x1xf32, #tpu.memory_space<vmem>>, %arg7: memref<16x8xf32, #tpu.memory_space<vmem>>) attributes {dimension_semantics = [], scalar_prefetch = 0 : i64, scratch_operands = 0 : i64, tpu.core_type = #tpu.core_type<tc>} {
    %c0 = arith.constant 0 : index
    %c0_0 = arith.constant 0 : index
    %0 = vector.load %arg0[%c0, %c0_0] : memref<18x8xf32, #tpu.memory_space<vmem>>, vector<18x8xf32>
    %c0_1 = arith.constant 0 : index
    %c0_2 = arith.constant 0 : index
    %1 = vector.load %arg1[%c0_1, %c0_2] : memref<32x18xf32, #tpu.memory_space<vmem>>, vector<32x18xf32>
    %c0_3 = arith.constant 0 : index
    %c0_4 = arith.constant 0 : index
    %2 = vector.load %arg2[%c0_3, %c0_4] : memref<32x1xf32, #tpu.memory_space<vmem>>, vector<32x1xf32>
    %cst = arith.constant dense<0.000000e+00> : vector<32x8xf32>
    %3 = tpu.matmul %1, %0, %cst {dimension_numbers = #tpu.dot_dimension_numbers<[1], [0], [0], [1], [0, 0, 1, 1], [], []>} : vector<32x18xf32>, vector<18x8xf32>, vector<32x8xf32> -> vector<32x8xf32>
    %4 = vector.broadcast %2 : vector<32x1xf32> to vector<32x8xf32>
    %5 = arith.addf %3, %4 : vector<32x8xf32>
    %cst_5 = arith.constant 0.000000e+00 : f32
    %6 = vector.broadcast %cst_5 : f32 to vector<32x8xf32>
    %7 = arith.maximumf %5, %6 : vector<32x8xf32>
    %c0_6 = arith.constant 0 : index
    %c0_7 = arith.constant 0 : index
    %8 = vector.load %arg3[%c0_6, %c0_7] : memref<32x32xf32, #tpu.memory_space<vmem>>, vector<32x32xf32>
    %c0_8 = arith.constant 0 : index
    %c0_9 = arith.constant 0 : index
    %9 = vector.load %arg4[%c0_8, %c0_9] : memref<32x1xf32, #tpu.memory_space<vmem>>, vector<32x1xf32>
    %cst_10 = arith.constant dense<0.000000e+00> : vector<32x8xf32>
    %10 = tpu.matmul %8, %7, %cst_10 {dimension_numbers = #tpu.dot_dimension_numbers<[1], [0], [0], [1], [0, 0, 1, 1], [], []>} : vector<32x32xf32>, vector<32x8xf32>, vector<32x8xf32> -> vector<32x8xf32>
    %11 = vector.broadcast %9 : vector<32x1xf32> to vector<32x8xf32>
    %12 = arith.addf %10, %11 : vector<32x8xf32>
    %cst_11 = arith.constant 0.000000e+00 : f32
    %13 = vector.broadcast %cst_11 : f32 to vector<32x8xf32>
    %14 = arith.maximumf %12, %13 : vector<32x8xf32>
    %c0_12 = arith.constant 0 : index
    %c0_13 = arith.constant 0 : index
    %15 = vector.load %arg5[%c0_12, %c0_13] : memref<16x32xf32, #tpu.memory_space<vmem>>, vector<16x32xf32>
    %c0_14 = arith.constant 0 : index
    %c0_15 = arith.constant 0 : index
    %16 = vector.load %arg6[%c0_14, %c0_15] : memref<16x1xf32, #tpu.memory_space<vmem>>, vector<16x1xf32>
    %cst_16 = arith.constant dense<0.000000e+00> : vector<16x8xf32>
    %17 = tpu.matmul %15, %14, %cst_16 {dimension_numbers = #tpu.dot_dimension_numbers<[1], [0], [0], [1], [0, 0, 1, 1], [], []>} : vector<16x32xf32>, vector<32x8xf32>, vector<16x8xf32> -> vector<16x8xf32>
    %18 = vector.broadcast %16 : vector<16x1xf32> to vector<16x8xf32>
    %19 = arith.addf %17, %18 : vector<16x8xf32>
    %20 = vector.extract_strided_slice %19 {offsets = [9, 0], sizes = [1, 8], strides = [1, 1]} : vector<16x8xf32> to vector<1x8xf32>
    %21 = math.tanh %20 : vector<1x8xf32>
    %22 = tpu.iota {dimensions = array<i32: 0>} : vector<16x8xi32>
    %c9_i32 = arith.constant 9 : i32
    %23 = vector.broadcast %c9_i32 : i32 to vector<16x8xi32>
    %24 = arith.cmpi eq, %22, %23 : vector<16x8xi32>
    %25 = vector.shape_cast %21 : vector<1x8xf32> to vector<1x8xf32>
    %26 = vector.broadcast %25 : vector<1x8xf32> to vector<16x8xf32>
    %27 = arith.select %24, %26, %19 : vector<16x8xi1>, vector<16x8xf32>
    %c0_17 = arith.constant 0 : index
    %c0_18 = arith.constant 0 : index
    %28 = vector.load %arg7[%c0_17, %c0_18] : memref<16x8xf32, #tpu.memory_space<vmem>>, vector<16x8xf32>
    tpu.vector_store %arg7[%c0_17, %c0_18], %27 {strides = array<i32>} : memref<16x8xf32, #tpu.memory_space<vmem>>, vector<16x8xf32>,
    return
  }
}

</mosaic_0001>

<bundles_post_ra>
// kernel: tictactoe_mlp_forward.1
= control target key start
LH: loop header
LB: loop body
LE: loop exit
PB: predicated region body
PF: predicated region fallthrough
CT: control target
= control target key end

     0   :  { %vm57_vm0 = vcmask 146432   ;;  %v501_v2 = vmov 0   ;;  %vm70_vm1 = vcmask 1041408   ;;  %vm191_vm2 = vcmask 261120   ;;  %s627_s0 = inlined_call_operand.vmem [shape: f32[18,8], index: 0, kind: input, shape index: {}]   ;;  %s628_s1 = inlined_call_operand.vmem [shape: f32[32,18], index: 1, kind: input, shape index: {}]   ;;  %s629_s2 = inlined_call_operand.vmem [shape: f32[32,1], index: 2, kind: input, shape index: {}]   ;;  %s630_s4 = inlined_call_operand.vmem [shape: f32[32,1], index: 4, kind: input, shape index: {}]   ;;  %s631_s6 = inlined_call_operand.vmem [shape: f32[16,1], index: 6, kind: input, shape index: {}]   ;;  %s632_s3 = inlined_call_operand.vmem [shape: f32[32,32], index: 3, kind: input, shape index: {}]   ;;  %s633_s5 = inlined_call_operand.vmem [shape: f32[16,32], index: 5, kind: input, shape index: {}]   ;;  %s634_s7 = inlined_call_operand.vmem [shape: f32[16,8], index: 7, kind: output, shape index: {}]  }
   0x1   :  { %v26_v0 = vld [vmem:[%s627_s0] sm:$0xff]  ;;  %v27_v1 = vld [vmem:[%s627_s0 + $0x8] sm:$0xff]  ;;  %497 = vset.pattern.permute.xlu0 %v501_v2  ;;  %498 = vset.pattern.permute.xlu1 %v501_v2  ;;  %v28_v5 = vld [vmem:[%s627_s0 + $0x10] sm:$0x3]  ;;  %vm400_vm3 = vcmask 64512  }
   0x2   :  { %v476_v3 = vpack.c.bf16 %v27_v1, %v26_v0  ;;  %v29_v4 = vld [vmem:[%s628_s1] sm:$0xff]  ;;  %v35_v7 = vld [vmem:[%s629_s2 + $0x10] sm:$0xff]  ;;  %v34_v8 = vld [vmem:[%s629_s2 + $0x8] sm:$0xff]  ;;  %v389_v1 = vlaneseq }
   0x3   :  { %445 = vmatprep.mubr.msk.f32.mxu0 %vm57_vm0, %v29_v4  ;;  %v33_v6 = vld [vmem:[%s629_s2] sm:$0xff]  ;;  %49 = vperm.xlu1 %498, %v35_v7   ;;  %v36_v9 = vld [vmem:[%s629_s2 + $0x18] sm:$0xff]  ;;  %v30_v10 = vld [vmem:[%s628_s1 + $0x8] sm:$0xff] }
   0x4   :  { %477 = vmatprep.subr.bf16.mxu0 %v476_v3  ;;  %39 = vperm.xlu0 %497, %v33_v6   ;;  %v31_v11 = vld [vmem:[%s628_s1 + $0x10] sm:$0xff]  ;;  %v167_v12 = vld [vmem:[%s630_s4] sm:$0xff]  ;;  %v168_v13 = vld [vmem:[%s630_s4 + $0x8] sm:$0xff]  ;;  %v390_v4 = vshrl.u32 %v389_v1, 7 }
   0x5   :  { %479 = vmatpush3.bf16.msra.mxu0 %v476_v3  ;;  %v32_v14 = vld [vmem:[%s628_s1 + $0x18] sm:$0xff]  ;;  %v169_v15 = vld [vmem:[%s630_s4 + $0x10] sm:$0xff]  ;;  %v296_v17 = vld [vmem:[%s631_s6 + $0x8] sm:$0xff] }
   0x6   :  { %443 = vmatprep.subr.msk.mxu0 %vm70_vm1, %v28_v5  ;;  %v170_v16 = vld [vmem:[%s630_s4 + $0x18] sm:$0xff]  ;;  %v295_v18 = vld [vmem:[%s631_s6] sm:$0xff]  ;;  %v164_v38 = vld [vmem:[%s632_s3 + $0x8] sm:$0xff]  ;;  %v396_v6 = vsub.s32 1, %v390_v4 }
   0x7   :  { %54 = vperm.xlu1 %498, %v36_v9   ;;  %v163_v19 = vld [vmem:[%s632_s3] sm:$0xff]  ;;  %v165_v39 = vld [vmem:[%s632_s3 + $0x10] sm:$0xff]  ;;  %v166_v40 = vld [vmem:[%s632_s3 + $0x18] sm:$0xff] }
   0x8   :  { %44 = vperm.xlu0 %497, %v34_v8   ;;  %459 = vmatprep.mubr.msk.f32.mxu1 %vm191_vm2, %v163_v19  ;;  %v293_v41 = vld [vmem:[%s633_s5] sm:$0xff]  ;;  %v294_v60 = vld [vmem:[%s633_s5 + $0x8] sm:$0xff] }
   0x9   :  { %444 = vmatpush3.msk.msra.mxu0 %vm70_vm1, %v28_v5  ;;  %v391_v5 = vadd.s32 8, %v390_v4 }
   0xa   :  { %446 = vmatmul.mubr.msk.f32.vlgmr.msra.gmra.mrb[0].mxu0 %vm57_vm0, %v30_v10 }
   0xb   :  { %448 = vmatprep.mubr.msk.f32.mxu0 %vm57_vm0, %v31_v11  ;;  %178 = vperm.xlu1 %498, %v168_v13   ;;  %vm393_vm4 = vcmp.eq.s32.totalorder %v391_v5, 9 }
   0xc   :  { %173 = vperm.xlu0 %497, %v167_v12  }
   0xe   :  { %449 = vmatmul.mubr.msk.f32.gmra.mrb[2].mxu0 %vm57_vm0, %v32_v14 }
   0xf   :  { %188 = vperm.xlu1 %498, %v170_v16   ;;  %473 = vmatprep.mubr.msk.f32.mxu0 %vm191_vm2, %v293_v41 }
  0x10   :  { %183 = vperm.xlu0 %497, %v169_v15  }
  0x13   :  { %299 = vperm.xlu1 %498, %v295_v18  }
  0x14   :  { %304 = vperm.xlu0 %497, %v296_v17  }
  0x82   :  { %v50_v21 = vpop.permute.xlu1 %49 }
  0x83   :  { %v40_v20 = vpop.permute.xlu0 %39 }
  0x86   :  { %v55_v28 = vpop.permute.xlu1 %54 }
  0x87   :  { %v45_v22 = vpop.permute.xlu0 %44 }
  0x8a   :  { %v179_v42 = vpop.permute.xlu1 %178 }
  0x8b   :  { %v174_v43 = vpop.permute.xlu0 %173 }
  0x8e   :  { %v189_v49 = vpop.permute.xlu1 %188 }
  0x8f   :  { %v184_v52 = vpop.permute.xlu0 %183 }
  0x92   :  { %v300_v63 = vpop.permute.xlu1 %299 }
  0x93   :  { %v305_v61 = vpop.permute.xlu0 %304 }
  0xdd   :  { %v447_v23 = vpop.f32.mrb[0].mxu0 }
  0xde   :  { %v146_v24 = vadd.f32 %v447_v23, %v45_v22  ;;  %v140_v25 = vpop.f32.mrb[1].mxu0 }
  0xdf   :  { %v141_v26 = vadd.f32 %v140_v25, %v40_v20 }
  0xe0   :  { %v160_v27 = vmax.f32 %v146_v24, 0.0 }
  0xe1   :  { %v159_v29 = vmax.f32 %v141_v26, 0.0  ;;  %v450_v30 = vpop.f32.mrb[2].mxu0 }
  0xe2   :  { %v156_v31 = vadd.f32 %v450_v30, %v55_v28  ;;  %v150_v32 = vpop.f32.mrb[3].mxu0 }
  0xe3   :  { %v151_v33 = vadd.f32 %v150_v32, %v50_v21  ;;  %v480_v34 = vpack.c.bf16 %v160_v27, %v159_v29 }
  0xe4   :  { %v162_v35 = vmax.f32 %v156_v31, 0.0 }
  0xe5   :  { %v161_v36 = vmax.f32 %v151_v33, 0.0  ;;  %481 = vmatprep.subr.bf16.mxu1 %v480_v34 }
  0xe6   :  { %483 = vmatpush3.bf16.msra.mxu1 %v480_v34 }
  0xe7   :  { %v484_v37 = vpack.c.bf16 %v162_v35, %v161_v36 }
  0xe9   :  { %485 = vmatprep.subr.bf16.mxu1 %v484_v37 }
  0xea   :  { %487 = vmatpush3.bf16.msra.mxu1 %v484_v37 }
  0xed   :  { %460 = vmatmul.mubr.msk.f32.vlgmr.msra.gmra.mrb[0].mxu1 %vm191_vm2, %v164_v38 }
  0xee   :  { %462 = vmatprep.mubr.msk.f32.mxu1 %vm191_vm2, %v165_v39 }
  0xf1   :  { %463 = vmatmul.mubr.msk.f32.gmra.mrb[2].mxu1 %vm191_vm2, %v166_v40 }
 0x1c0   :  { %v461_v44 = vpop.f32.mrb[0].mxu1 }
 0x1c1   :  { %v276_v45 = vadd.f32 %v461_v44, %v179_v42  ;;  %v270_v46 = vpop.f32.mrb[1].mxu1 }
 0x1c2   :  { %v271_v47 = vadd.f32 %v270_v46, %v174_v43 }
 0x1c3   :  { %v290_v48 = vmax.f32 %v276_v45, 0.0 }
 0x1c4   :  { %v289_v50 = vmax.f32 %v271_v47, 0.0  ;;  %v464_v51 = vpop.f32.mrb[2].mxu1 }
 0x1c5   :  { %v286_v53 = vadd.f32 %v464_v51, %v189_v49  ;;  %v280_v54 = vpop.f32.mrb[3].mxu1 }
 0x1c6   :  { %v488_v55 = vpack.c.bf16 %v290_v48, %v289_v50  ;;  %v281_v56 = vadd.f32 %v280_v54, %v184_v52 }
 0x1c7   :  { %v292_v57 = vmax.f32 %v286_v53, 0.0 }
 0x1c8   :  { %v291_v58 = vmax.f32 %v281_v56, 0.0  ;;  %489 = vmatprep.subr.bf16.mxu0 %v488_v55 }
 0x1c9   :  { %491 = vmatpush3.bf16.msra.mxu0 %v488_v55 }
 0x1ca   :  { %v492_v59 = vpack.c.bf16 %v292_v57, %v291_v58 }
 0x1cc   :  { %493 = vmatprep.subr.bf16.mxu0 %v492_v59 }
 0x1cd   :  { %495 = vmatpush3.bf16.msra.mxu0 %v492_v59 }
 0x1d0   :  { %474 = vmatmul.mubr.msk.f32.vlgmr.msra.gmra.mrb[4].mxu0 %vm191_vm2, %v294_v60 }
 0x2a3   :  { %v475_v62 = vpop.f32.mrb[4].mxu0 }
 0x2a4   :  { %v385_v0 = vadd.f32 %v475_v62, %v305_v61  ;;  %v379_v2 = vpop.f32.mrb[5].mxu0 }
 0x2a5   :  { %v380_v3 = vadd.f32 %v379_v2, %v300_v63 }
 0x2a6   :  { %499 = vtanh.f32 %v385_v0 }
 0x2a7   :  { %401 = vst.msk [vmem:[%s634_s7] sm:$0xff] %vm400_vm3, %v380_v3 }
 0x2b0   :  { %v500_v7 = vpop.eup %499 }
 0x2b1   :  { %v397_v8 = vrot.slane %v500_v7, %v396_v6 }
 0x2b3   :  { %v399_v9 = vsel %vm393_vm4, %v397_v8, %v385_v0 }
 0x2b4   :  { %402 = vst.msk [vmem:[%s634_s7 + $0x8] sm:$0xff] %vm400_vm3, %v399_v9 }

</bundles_post_ra>
